<compile_context>
chip_gen: v7x
topology: tpu7x:2x2x1
jax: 0.10.0
libtpu: 0.0.40
codegen_flags: <defaults>
</compile_context>

<pallas_src>
import jax
import jax.numpy as jnp
from jax import lax
from jax.experimental import pallas as pl
from jax.experimental.pallas import tpu as pltpu


def _round_up(x, m):
    return (x + m - 1) // m * m


def _mlp_lane_major(x_tile, w_refs, b_refs, compute_dtype):
    """Runs the Linear+ReLU stack on one M tile, lane-dense.

    x_tile: (TM, D_in) float (native row-major batch tile)
    returns h^T: (F, TM) float32 with ReLU applied after every layer
    (activate_final=True).  The x^T transpose is fused into the first matmul
    (dot_general contracting dim 1 of both operands), so neither the wrapper
    nor the kernel pays a standalone transpose on the input side.
    """
    n = len(w_refs)
    xb = x_tile.astype(compute_dtype)               # bf16 cast fused in-kernel
    # h^T = W1 @ x^T  ==  dot_general(W1[F,K], x[TM,K]; contract K with K)
    h = lax.dot_general(w_refs[0][...], xb,
                        dimension_numbers=(((1,), (1,)), ((), ())),
                        preferred_element_type=jnp.float32)
    h = jnp.maximum(h + b_refs[0][...], 0.0)        # f32 elementwise (v5e-safe)
    for i in range(1, n):
        h = jnp.dot(w_refs[i][...], h.astype(compute_dtype),
                    preferred_element_type=jnp.float32)
        h = jnp.maximum(h + b_refs[i][...], 0.0)
    return h                                         # (F, TM) float32


def _make_single_tile_kernel(n_layers, eps, m_valid, tile_m, compute_dtype):
    """Fast path: whole flattened batch in one M tile.  Single pass:
    MLP -> batch statistics -> folded BN -> transposed (TM, F) store."""
    ragged = tile_m != m_valid

    def kernel(*refs):
        x_ref = refs[0]                              # (TM, D_in)
        w_refs = [refs[1 + 2 * i] for i in range(n_layers)]
        b_refs = [refs[2 + 2 * i] for i in range(n_layers)]
        gamma_ref = refs[1 + 2 * n_layers]           # (F, 1) f32
        beta_ref = refs[2 + 2 * n_layers]            # (F, 1) f32
        out_ref = refs[3 + 2 * n_layers]             # (TM, F) f32

        h = _mlp_lane_major(x_ref[...], w_refs, b_refs, compute_dtype)

        if ragged:
            col = lax.broadcasted_iota(jnp.int32, (1, tile_m), 1)
            hm = jnp.where(col < m_valid, h, 0.0)
        else:
            hm = h
        inv_m = 1.0 / float(m_valid)
        mean = jnp.sum(hm, axis=1, keepdims=True) * inv_m
        ex2 = jnp.sum(hm * hm, axis=1, keepdims=True) * inv_m
        var = jnp.maximum(ex2 - mean * mean, 0.0)
        scale = lax.rsqrt(var + eps) * gamma_ref[...]
        shift = beta_ref[...] - mean * scale
        # Store directly in (M, F) row-major layout; rows >= m_valid of the
        # padded tile are dropped by Pallas' out-of-bounds write masking.
        out_ref[...] = jnp.transpose(h * scale + shift)

    return kernel


def _make_two_pass_kernel(n_layers, eps, m_valid, tile_m, n_tiles,
                          compute_dtype):
    """General path, grid = (2, n_tiles).

    pass 0 (stats): run the MLP per tile and accumulate per-feature sum /
        sum-of-squares into lane-parallel (F, 128) VMEM partials — pure VALU
        adds over 128-wide aligned lane slices; only the ragged last tile pays
        the padding mask.
    pass 1 (normalize): reduce the partials once (tile 0), fold BN into
        scale/shift, re-run the (cheap) MLP per tile, normalize, transpose to
        (TM, F) and store.  Recomputing h avoids an HBM round trip of the
        activations and keeps everything in one pallas_call.
    """
    ragged = n_tiles * tile_m != m_valid
    last = n_tiles - 1

    def kernel(*refs):
        x_ref = refs[0]                              # (TM, D_in)
        w_refs = [refs[1 + 2 * i] for i in range(n_layers)]
        b_refs = [refs[2 + 2 * i] for i in range(n_layers)]
        gamma_ref = refs[1 + 2 * n_layers]           # (F, 1) f32
        beta_ref = refs[2 + 2 * n_layers]            # (F, 1) f32
        out_ref = refs[3 + 2 * n_layers]             # (TM, F) f32
        sum_ref = refs[4 + 2 * n_layers]             # (F, 128) f32 scratch
        sumsq_ref = refs[5 + 2 * n_layers]           # (F, 128) f32 scratch
        scale_ref = refs[6 + 2 * n_layers]           # (F, 1)   f32 scratch
        shift_ref = refs[7 + 2 * n_layers]           # (F, 1)   f32 scratch

        p = pl.program_id(0)                         # 0 = stats, 1 = normalize
        ti = pl.program_id(1)                        # M-tile index

        h = _mlp_lane_major(x_ref[...], w_refs, b_refs, compute_dtype)

        @pl.when(p == 0)
        def _stats_pass():
            @pl.when(ti == 0)
            def _init():
                sum_ref[...] = jnp.zeros_like(sum_ref)
                sumsq_ref[...] = jnp.zeros_like(sumsq_ref)
                # The output block index stays pinned at (0, 0) for the whole
                # stats pass and is only flushed after pass 1 writes it
                # (Pallas writes back on block-index change).  Zero-init is
                # cheap insurance against that revisit behavior ever changing.
                out_ref[...] = jnp.zeros_like(out_ref)

            def accumulate(hm):
                # Lane-parallel accumulation: pure VALU adds; the single
                # cross-lane reduction happens once, at the start of pass 1.
                s = sum_ref[...]
                ss = sumsq_ref[...]
                for k in range(tile_m // 128):
                    blk = hm[:, k * 128:(k + 1) * 128]
                    s = s + blk
                    ss = ss + blk * blk
                sum_ref[...] = s
                sumsq_ref[...] = ss

            if ragged:
                # Only the ragged last tile pays iota + compare + select.
                @pl.when(ti == last)
                def _():
                    col = last * tile_m + lax.broadcasted_iota(
                        jnp.int32, (1, tile_m), 1)
                    accumulate(jnp.where(col < m_valid, h, 0.0))

                @pl.when(ti != last)
                def _():
                    accumulate(h)
            else:
                accumulate(h)

        @pl.when(jnp.logical_and(p == 1, ti == 0))
        def _finalize_stats():
            # TODO(synk): E[x^2] - mean^2 in f32 can cancel for very large M
            # with large post-ReLU means; a Welford/mean-shifted merge would
            # be more robust than this single-pass form.
            inv_m = 1.0 / float(m_valid)
            mean = jnp.sum(sum_ref[...], axis=1, keepdims=True) * inv_m
            ex2 = jnp.sum(sumsq_ref[...], axis=1, keepdims=True) * inv_m
            var = jnp.maximum(ex2 - mean * mean, 0.0)
            scale = lax.rsqrt(var + eps) * gamma_ref[...]
            scale_ref[...] = scale
            shift_ref[...] = beta_ref[...] - mean * scale

        @pl.when(p == 1)
        def _normalize_pass():
            z = h * scale_ref[...] + shift_ref[...]          # (F, TM) f32
            # One in-kernel transpose per tile so the result lands directly in
            # the (M, F) layout the caller needs — no wrapper-side `.T` HBM
            # pass.  Out-of-bounds rows of the ragged last tile are dropped.
            out_ref[...] = jnp.transpose(z)

    return kernel


def mlp_model_forward(x, weights, biases, gamma, beta, *, eps=1e-5,
                      compute_dtype=jnp.bfloat16, max_tile_m=4096):
    """Pallas implementation of MLPModel.forward (norm='batch').

    x:          [..., D_in]        (arbitrary leading batch dims, float)
    weights[i]: [D_{i+1}, D_i]     (torch nn.Linear layout [out, in])
    biases[i]:  [D_{i+1}]
    gamma/beta: [F]                (BatchNorm1d affine parameters)

    x is consumed in its native (M, D_in) layout and the result is produced
    directly as (..., F) float32 — no wrapper-side transpose / pad / cast
    passes over HBM.  Use compute_dtype=jnp.float32 for closer PyTorch parity.
    """
    n_layers = len(weights)
    orig_shape = x.shape
    d_in = orig_shape[-1]
    f_out = weights[-1].shape[0]

    x2d = x.reshape(-1, d_in)
    m = x2d.shape[0]

    # Fat lane-aligned M tiles amortize the ~0.35 us/grid-step overhead; the
    # per-tile VMEM footprint stays tiny (< ~3 MiB at TM=4096), comfortably
    # inside the default scoped-VMEM budget on every generation (incl. v7x).
    tile_m = min(_round_up(max_tile_m, 128), _round_up(m, 128))
    n_tiles = pl.cdiv(m, tile_m)

    params = []
    for w, b in zip(weights, biases):
        params.append(jnp.asarray(w).astype(compute_dtype))                # (out, in)
        params.append(jnp.asarray(b).reshape(-1, 1).astype(jnp.float32))   # (out, 1)
    params.append(jnp.asarray(gamma).reshape(-1, 1).astype(jnp.float32))   # (F, 1)
    params.append(jnp.asarray(beta).reshape(-1, 1).astype(jnp.float32))    # (F, 1)

    out_shape = jax.ShapeDtypeStruct((m, f_out), jnp.float32)

    if n_tiles == 1:
        # Single-tile fast path: one grid step, no MLP recompute, no scratch.
        kernel = _make_single_tile_kernel(n_layers, eps, m, tile_m,
                                          compute_dtype)
        in_specs = [pl.BlockSpec((tile_m, d_in), lambda i: (0, 0))]
        for prm in params:
            in_specs.append(pl.BlockSpec(prm.shape, lambda i: (0, 0)))
        out2d = pl.pallas_call(
            kernel,
            out_shape=out_shape,
            grid=(1,),
            in_specs=in_specs,
            out_specs=pl.BlockSpec((tile_m, f_out), lambda i: (0, 0)),
            compiler_params=pltpu.CompilerParams(
                dimension_semantics=("arbitrary",)),
        )(x2d, *params)
    else:
        kernel = _make_two_pass_kernel(n_layers, eps, m, tile_m, n_tiles,
                                       compute_dtype)
        in_specs = [pl.BlockSpec((tile_m, d_in), lambda p, i: (i, 0))]
        for prm in params:
            # Tiny parameters: full-array blocks with a constant index map
            # (fetched once, no per-step re-DMA).
            in_specs.append(pl.BlockSpec(prm.shape, lambda p, i: (0, 0)))
        # Stats pass (p == 0): output block index pinned at (0, 0) and never
        # flushed before the normalize pass writes it; normalize pass (p == 1)
        # walks the tiles and writes each exactly once.
        out_specs = pl.BlockSpec((tile_m, f_out), lambda p, i: (i * p, 0))
        out2d = pl.pallas_call(
            kernel,
            out_shape=out_shape,
            grid=(2, n_tiles),
            in_specs=in_specs,
            out_specs=out_specs,
            scratch_shapes=[pltpu.VMEM((f_out, 128), jnp.float32),  # sum partials
                            pltpu.VMEM((f_out, 128), jnp.float32),  # sumsq partials
                            pltpu.VMEM((f_out, 1), jnp.float32),    # BN scale
                            pltpu.VMEM((f_out, 1), jnp.float32)],   # BN shift
            compiler_params=pltpu.CompilerParams(
                # Both axes are sequential: the tile axis accumulates global
                # BN statistics into shared scratch; the pass axis orders
                # statistics before normalization (see megacore note above).
                dimension_semantics=("arbitrary", "arbitrary")),
        )(x2d, *params)

    return out2d.reshape(orig_shape[:-1] + (f_out,))


def _init_params(key, layer_sizes):
    """Deterministic init matching torch nn.Linear / BatchNorm1d shapes."""
    weights, biases = [], []
    for i in range(len(layer_sizes) - 1):
        fan_in, fan_out = layer_sizes[i], layer_sizes[i + 1]
        key, kw, kb = jax.random.split(key, 3)
        bound = float(fan_in) ** -0.5
        # torch layout: weight [out, in], bias [out]
        weights.append(jax.random.uniform(kw, (fan_out, fan_in),
                                          jnp.float32, -bound, bound))
        biases.append(jax.random.uniform(kb, (fan_out,),
                                         jnp.float32, -bound, bound))
    f = layer_sizes[-1]
    gamma = jnp.ones((f,), jnp.float32)    # BatchNorm1d affine init
    beta = jnp.zeros((f,), jnp.float32)
    return weights, biases, gamma, beta


def _reference_forward(x, weights, biases, gamma, beta, *, eps=1e-5,
                       compute_dtype=jnp.float32):
    """Pure-JAX reference. compute_dtype=bfloat16 mirrors the kernel's matmul
    precision; compute_dtype=float32 is the PyTorch-f32 semantics."""
    n = len(weights)
    h = x.reshape(-1, x.shape[-1]).astype(compute_dtype)
    for i, (w, b) in enumerate(zip(weights, biases)):
        acc = jnp.dot(h, w.astype(compute_dtype).T,
                      preferred_element_type=jnp.float32)
        acc = jnp.maximum(acc + b.astype(jnp.float32)[None, :], 0.0)
        h = acc.astype(compute_dtype) if i < n - 1 else acc
    mean = jnp.mean(h, axis=0, keepdims=True)
    var = jnp.maximum(jnp.mean(h * h, axis=0, keepdims=True) - mean * mean, 0.0)
    z = (h - mean) * lax.rsqrt(var + eps) * gamma[None, :] + beta[None, :]
    return z.reshape(x.shape[:-1] + (h.shape[-1],))


if __name__ == "__main__":
    # MLPModel(internal_d=32, layer_n=3, input_d=16, norm='batch')
    internal_d, layer_n, input_d = 32, 3, 16
    layer_sizes = [internal_d] * (layer_n + 1)
    layer_sizes[0] = input_d                     # -> [16, 32, 32, 32]

    key = jax.random.PRNGKey(0)
    key, kx = jax.random.split(key)
    # x: [batch=2, seq=8, input_d=16]; flattened batch dim M = 16
    # -> single-tile fast path (one padded 128-lane tile, masked statistics).
    x = jax.random.normal(kx, (2, 8, input_d), jnp.float32)

    weights, biases, gamma, beta = _init_params(key, layer_sizes)

    out = mlp_model_forward(x, weights, biases, gamma, beta)
    out = jax.block_until_ready(out)
    assert out.shape == (2, 8, internal_d), out.shape

    # Tight check against a reference using the kernel's bf16 matmul precision.
    ref_bf16 = _reference_forward(x, weights, biases, gamma, beta,
                                  compute_dtype=jnp.bfloat16)
    assert jnp.allclose(out, ref_bf16, atol=2e-2, rtol=2e-2), \
        "mismatch vs bf16-precision reference (fast path)"
    # Loose sanity check of full-f32 PyTorch semantics under bf16 compute.
    ref_f32 = _reference_forward(x, weights, biases, gamma, beta,
                                 compute_dtype=jnp.float32)
    assert jnp.allclose(out, ref_f32, atol=0.25, rtol=0.1), \
        "mismatch vs f32 reference"

    # Multi-tile two-pass path with a ragged last tile:
    # M = 300, tile_m = 128 -> 3 tiles, 84 out-of-bounds rows in the last tile
    # (masked out of the statistics; dropped on store).
    key, kx2 = jax.random.split(key)
    x2 = jax.random.normal(kx2, (4, 75, input_d), jnp.float32)
    out2 = mlp_model_forward(x2, weights, biases, gamma, beta, max_tile_m=128)
    out2 = jax.block_until_ready(out2)
    ref2 = _reference_forward(x2, weights, biases, gamma, beta,
                              compute_dtype=jnp.bfloat16)
    assert out2.shape == (4, 75, internal_d), out2.shape
    assert jnp.allclose(out2, ref2, atol=2e-2, rtol=2e-2), \
        "mismatch vs reference (multi-tile / ragged case)"

    print("KERNEL_OK")
</pallas_src>

<mosaic_0001>
module attributes {stable_mosaic.version = 11 : i64} {
  func.func @kernel(%arg0: i32, %arg1: memref<128x16xf32, #tpu.memory_space<vmem>>, %arg2: memref<32x16xbf16, #tpu.memory_space<vmem>>, %arg3: memref<32x1xf32, #tpu.memory_space<vmem>>, %arg4: memref<32x32xbf16, #tpu.memory_space<vmem>>, %arg5: memref<32x1xf32, #tpu.memory_space<vmem>>, %arg6: memref<32x32xbf16, #tpu.memory_space<vmem>>, %arg7: memref<32x1xf32, #tpu.memory_space<vmem>>, %arg8: memref<32x1xf32, #tpu.memory_space<vmem>>, %arg9: memref<32x1xf32, #tpu.memory_space<vmem>>, %arg10: memref<128x32xf32, #tpu.memory_space<vmem>>) attributes {dimension_semantics = [#tpu.dimension_semantics<arbitrary>], iteration_bounds = array<i64: 1>, scalar_prefetch = 0 : i64, scratch_operands = 0 : i64, tpu.core_type = #tpu.core_type<tc>, window_params = [{transform_indices = @transform_0, window_bounds = array<i64: 128, 16>}, {pipeline_mode = #tpu.pipeline_mode<synchronous>, transform_indices = @transform_1, window_bounds = array<i64: 32, 16>}, {pipeline_mode = #tpu.pipeline_mode<synchronous>, transform_indices = @transform_2, window_bounds = array<i64: 32, 1>}, {pipeline_mode = #tpu.pipeline_mode<synchronous>, transform_indices = @transform_3, window_bounds = array<i64: 32, 32>}, {pipeline_mode = #tpu.pipeline_mode<synchronous>, transform_indices = @transform_4, window_bounds = array<i64: 32, 1>}, {pipeline_mode = #tpu.pipeline_mode<synchronous>, transform_indices = @transform_5, window_bounds = array<i64: 32, 32>}, {pipeline_mode = #tpu.pipeline_mode<synchronous>, transform_indices = @transform_6, window_bounds = array<i64: 32, 1>}, {pipeline_mode = #tpu.pipeline_mode<synchronous>, transform_indices = @transform_7, window_bounds = array<i64: 32, 1>}, {pipeline_mode = #tpu.pipeline_mode<synchronous>, transform_indices = @transform_8, window_bounds = array<i64: 32, 1>}, {transform_indices = @transform_9, window_bounds = array<i64: 128, 32>}]} {
    %c0 = arith.constant 0 : index
    %c0_0 = arith.constant 0 : index
    %0 = vector.load %arg1[%c0, %c0_0] : memref<128x16xf32, #tpu.memory_space<vmem>>, vector<128x16xf32>
    %1 = arith.truncf %0 : vector<128x16xf32> to vector<128x16xbf16>
    %c0_1 = arith.constant 0 : index
    %c0_2 = arith.constant 0 : index
    %2 = vector.load %arg2[%c0_1, %c0_2] : memref<32x16xbf16, #tpu.memory_space<vmem>>, vector<32x16xbf16>
    %cst = arith.constant dense<0.000000e+00> : vector<32x128xf32>
    %3 = tpu.matmul %2, %1, %cst {dimension_numbers = #tpu.dot_dimension_numbers<[1], [1], [0], [0], [0, 0, 1, 0], [], []>} : vector<32x16xbf16>, vector<128x16xbf16>, vector<32x128xf32> -> vector<32x128xf32>
    %c0_3 = arith.constant 0 : index
    %c0_4 = arith.constant 0 : index
    %4 = vector.load %arg3[%c0_3, %c0_4] : memref<32x1xf32, #tpu.memory_space<vmem>>, vector<32x1xf32>
    %5 = vector.broadcast %4 : vector<32x1xf32> to vector<32x128xf32>
    %6 = arith.addf %3, %5 : vector<32x128xf32>
    %cst_5 = arith.constant 0.000000e+00 : f32
    %7 = vector.broadcast %cst_5 : f32 to vector<32x128xf32>
    %8 = arith.maximumf %6, %7 : vector<32x128xf32>
    %c0_6 = arith.constant 0 : index
    %c0_7 = arith.constant 0 : index
    %9 = vector.load %arg4[%c0_6, %c0_7] : memref<32x32xbf16, #tpu.memory_space<vmem>>, vector<32x32xbf16>
    %10 = arith.truncf %8 : vector<32x128xf32> to vector<32x128xbf16>
    %cst_8 = arith.constant dense<0.000000e+00> : vector<32x128xf32>
    %11 = tpu.matmul %9, %10, %cst_8 {dimension_numbers = #tpu.dot_dimension_numbers<[1], [0], [0], [1], [0, 0, 1, 1], [], []>} : vector<32x32xbf16>, vector<32x128xbf16>, vector<32x128xf32> -> vector<32x128xf32>
    %c0_9 = arith.constant 0 : index
    %c0_10 = arith.constant 0 : index
    %12 = vector.load %arg5[%c0_9, %c0_10] : memref<32x1xf32, #tpu.memory_space<vmem>>, vector<32x1xf32>
    %13 = vector.broadcast %12 : vector<32x1xf32> to vector<32x128xf32>
    %14 = arith.addf %11, %13 : vector<32x128xf32>
    %cst_11 = arith.constant 0.000000e+00 : f32
    %15 = vector.broadcast %cst_11 : f32 to vector<32x128xf32>
    %16 = arith.maximumf %14, %15 : vector<32x128xf32>
    %c0_12 = arith.constant 0 : index
    %c0_13 = arith.constant 0 : index
    %17 = vector.load %arg6[%c0_12, %c0_13] : memref<32x32xbf16, #tpu.memory_space<vmem>>, vector<32x32xbf16>
    %18 = arith.truncf %16 : vector<32x128xf32> to vector<32x128xbf16>
    %cst_14 = arith.constant dense<0.000000e+00> : vector<32x128xf32>
    %19 = tpu.matmul %17, %18, %cst_14 {dimension_numbers = #tpu.dot_dimension_numbers<[1], [0], [0], [1], [0, 0, 1, 1], [], []>} : vector<32x32xbf16>, vector<32x128xbf16>, vector<32x128xf32> -> vector<32x128xf32>
    %c0_15 = arith.constant 0 : index
    %c0_16 = arith.constant 0 : index
    %20 = vector.load %arg7[%c0_15, %c0_16] : memref<32x1xf32, #tpu.memory_space<vmem>>, vector<32x1xf32>
    %21 = vector.broadcast %20 : vector<32x1xf32> to vector<32x128xf32>
    %22 = arith.addf %19, %21 : vector<32x128xf32>
    %cst_17 = arith.constant 0.000000e+00 : f32
    %23 = vector.broadcast %cst_17 : f32 to vector<32x128xf32>
    %24 = arith.maximumf %22, %23 : vector<32x128xf32>
    %25 = tpu.iota {dimensions = array<i32: 1>} : vector<1x128xi32>
    %c16_i32 = arith.constant 16 : i32
    %26 = vector.broadcast %c16_i32 : i32 to vector<1x128xi32>
    %27 = arith.cmpi slt, %25, %26 : vector<1x128xi32>
    %cst_18 = arith.constant 0.000000e+00 : f32
    %28 = vector.shape_cast %27 : vector<1x128xi1> to vector<1x128xi1>
    %29 = vector.broadcast %28 : vector<1x128xi1> to vector<32x128xi1>
    %30 = vector.broadcast %cst_18 : f32 to vector<32x128xf32>
    %31 = arith.select %29, %24, %30 : vector<32x128xi1>, vector<32x128xf32>
    %cst_19 = arith.constant dense<0.000000e+00> : vector<32xf32>
    %32 = vector.multi_reduction <add>, %31, %cst_19 [1] : vector<32x128xf32> to vector<32xf32>
    %33 = vector.shape_cast %32 : vector<32xf32> to vector<32x1xf32>
    %cst_20 = arith.constant 6.250000e-02 : f32
    %34 = vector.broadcast %cst_20 : f32 to vector<32x1xf32>
    %35 = arith.mulf %33, %34 : vector<32x1xf32>
    %36 = arith.mulf %31, %31 : vector<32x128xf32>
    %cst_21 = arith.constant dense<0.000000e+00> : vector<32xf32>
    %37 = vector.multi_reduction <add>, %36, %cst_21 [1] : vector<32x128xf32> to vector<32xf32>
    %38 = vector.shape_cast %37 : vector<32xf32> to vector<32x1xf32>
    %cst_22 = arith.constant 6.250000e-02 : f32
    %39 = vector.broadcast %cst_22 : f32 to vector<32x1xf32>
    %40 = arith.mulf %38, %39 : vector<32x1xf32>
    %41 = arith.mulf %35, %35 : vector<32x1xf32>
    %42 = arith.subf %40, %41 : vector<32x1xf32>
    %cst_23 = arith.constant 0.000000e+00 : f32
    %43 = vector.broadcast %cst_23 : f32 to vector<32x1xf32>
    %44 = arith.maximumf %42, %43 : vector<32x1xf32>
    %cst_24 = arith.constant 9.99999974E-6 : f32
    %45 = vector.broadcast %cst_24 : f32 to vector<32x1xf32>
    %46 = arith.addf %44, %45 : vector<32x1xf32>
    %47 = math.rsqrt %46 : vector<32x1xf32>
    %c0_25 = arith.constant 0 : index
    %c0_26 = arith.constant 0 : index
    %48 = vector.load %arg8[%c0_25, %c0_26] : memref<32x1xf32, #tpu.memory_space<vmem>>, vector<32x1xf32>
    %49 = arith.mulf %47, %48 : vector<32x1xf32>
    %c0_27 = arith.constant 0 : index
    %c0_28 = arith.constant 0 : index
    %50 = vector.load %arg9[%c0_27, %c0_28] : memref<32x1xf32, #tpu.memory_space<vmem>>, vector<32x1xf32>
    %51 = arith.mulf %35, %49 : vector<32x1xf32>
    %52 = arith.subf %50, %51 : vector<32x1xf32>
    %53 = vector.broadcast %49 : vector<32x1xf32> to vector<32x128xf32>
    %54 = arith.mulf %24, %53 : vector<32x128xf32>
    %55 = vector.broadcast %52 : vector<32x1xf32> to vector<32x128xf32>
    %56 = arith.addf %54, %55 : vector<32x128xf32>
    %57 = tpu.transpose %56, [1, 0] : vector<32x128xf32> -> vector<128x32xf32>
    %c0_29 = arith.constant 0 : index
    %c0_30 = arith.constant 0 : index
    %58 = vector.load %arg10[%c0_29, %c0_30] : memref<128x32xf32, #tpu.memory_space<vmem>>, vector<128x32xf32>
    tpu.vector_store %arg10[%c0_29, %c0_30], %57 {strides = array<i32>} : memref<128x32xf32, #tpu.memory_space<vmem>>, vector<128x32xf32>,
    return
  }
  func.func @transform_0(%arg0: i32) -> (i32, i32) {
    %c0_i32 = arith.constant 0 : i32
    %c0_i32_0 = arith.constant 0 : i32
    %c0_i32_1 = arith.constant 0 : i32
    return %c0_i32, %c0_i32_0 : i32, i32
  }
  func.func @transform_1(%arg0: i32) -> (i32, i32) {
    %c0_i32 = arith.constant 0 : i32
    %c0_i32_0 = arith.constant 0 : i32
    %c0_i32_1 = arith.constant 0 : i32
    return %c0_i32, %c0_i32_0 : i32, i32
  }
  func.func @transform_2(%arg0: i32) -> (i32, i32) {
    %c0_i32 = arith.constant 0 : i32
    %c0_i32_0 = arith.constant 0 : i32
    %c0_i32_1 = arith.constant 0 : i32
    return %c0_i32, %c0_i32_0 : i32, i32
  }
  func.func @transform_3(%arg0: i32) -> (i32, i32) {
    %c0_i32 = arith.constant 0 : i32
    %c0_i32_0 = arith.constant 0 : i32
    %c0_i32_1 = arith.constant 0 : i32
    return %c0_i32, %c0_i32_0 : i32, i32
  }
  func.func @transform_4(%arg0: i32) -> (i32, i32) {
    %c0_i32 = arith.constant 0 : i32
    %c0_i32_0 = arith.constant 0 : i32
    %c0_i32_1 = arith.constant 0 : i32
    return %c0_i32, %c0_i32_0 : i32, i32
  }
  func.func @transform_5(%arg0: i32) -> (i32, i32) {
    %c0_i32 = arith.constant 0 : i32
    %c0_i32_0 = arith.constant 0 : i32
    %c0_i32_1 = arith.constant 0 : i32
    return %c0_i32, %c0_i32_0 : i32, i32
  }
  func.func @transform_6(%arg0: i32) -> (i32, i32) {
    %c0_i32 = arith.constant 0 : i32
    %c0_i32_0 = arith.constant 0 : i32
    %c0_i32_1 = arith.constant 0 : i32
    return %c0_i32, %c0_i32_0 : i32, i32
  }
  func.func @transform_7(%arg0: i32) -> (i32, i32) {
    %c0_i32 = arith.constant 0 : i32
    %c0_i32_0 = arith.constant 0 : i32
    %c0_i32_1 = arith.constant 0 : i32
    return %c0_i32, %c0_i32_0 : i32, i32
  }
  func.func @transform_8(%arg0: i32) -> (i32, i32) {
    %c0_i32 = arith.constant 0 : i32
    %c0_i32_0 = arith.constant 0 : i32
    %c0_i32_1 = arith.constant 0 : i32
    return %c0_i32, %c0_i32_0 : i32, i32
  }
  func.func @transform_9(%arg0: i32) -> (i32, i32) {
    %c0_i32 = arith.constant 0 : i32
    %c0_i32_0 = arith.constant 0 : i32
    %c0_i32_1 = arith.constant 0 : i32
    return %c0_i32, %c0_i32_0 : i32, i32
  }
}

</mosaic_0001>

<bundles_post_ra>
// kernel: tpu_custom_call.1
= control target key start
LH: loop header
LB: loop body
LE: loop exit
PB: predicated region body
PF: predicated region fallthrough
CT: control target
= control target key end

     0   :  { %14 = vsyncpa [#allocation3], 0  ;;  %vm96_vm0 = vcmask 130048   ;;  %v687_v5 = vmov 0   ;;  %vm220_vm1 = vcmask 261120   ;;  %s949_s0 = inlined_call_operand.vmem [shape: f32[16,16], index: 0, kind: input, shape index: {}]   ;;  %s950_s1 = inlined_call_operand.vmem [shape: bf16[32,16], index: 1, kind: input, shape index: {}]   ;;  %s951_s2 = inlined_call_operand.vmem [shape: f32[32,1], index: 2, kind: input, shape index: {}]   ;;  %s952_s3 = inlined_call_operand.vmem [shape: bf16[32,32], index: 3, kind: input, shape index: {}]   ;;  %s953_s4 = inlined_call_operand.vmem [shape: f32[32,1], index: 4, kind: input, shape index: {}]   ;;  %s954_s5 = inlined_call_operand.vmem [shape: bf16[32,32], index: 5, kind: input, shape index: {}]   ;;  %s955_s6 = inlined_call_operand.vmem [shape: f32[32,1], index: 6, kind: input, shape index: {}]   ;;  %s956_s7 = inlined_call_operand.vmem [shape: f32[32,1], index: 7, kind: input, shape index: {}]   ;;  %s957_s8 = inlined_call_operand.vmem [shape: f32[32,1], index: 8, kind: input, shape index: {}]   ;;  %s958_s9 = inlined_call_operand.hbm [shape: f32[16,32], index: 9, kind: output, shape index: {}]  }
   0x1   :  { %v34_v0 = vld [vmem:[%s949_s0] sm:$0xff]  ;;  %v35_v1 = vld [vmem:[%s949_s0 + $0x8] sm:$0xff]  ;;  %v36_v3 = vld [vmem:[%s949_s0 + $0x10] sm:$0xff]  ;;  %647 = vset.pattern.permute.xlu0 %v687_v5  ;;  %648 = vset.pattern.permute.xlu1 %v687_v5 }
   0x2   :  { %v50_v2 = vpack.c.bf16 %v35_v1, %v34_v0  ;;  %v37_v4 = vld [vmem:[%s949_s0 + $0x18] sm:$0xff]  ;;  %v38_v8 = vld [vmem:[%s949_s0 + $0x20] sm:$0xff]  ;;  %v39_v9 = vld [vmem:[%s949_s0 + $0x28] sm:$0xff] }
   0x3   :  { %v51_v6 = vpack.c.bf16 %v37_v4, %v36_v3  ;;  %v649_v10 = vld [vmem:[%s950_s1] sm:$0xff]   ;;  %v64_v12 = vld [vmem:[%s951_s2 + $0x10] sm:$0xff]  ;;  %v52_v14 = vpack.c.bf16 %v39_v9, %v38_v8  ;;  %v63_v15 = vld [vmem:[%s951_s2 + $0x8] sm:$0xff] }
   0x4   :  { %634 = vmatprep.subr.msk.bf16.mxu0 %vm96_vm0, %v50_v2  ;;  %v104_v7 = vsel %vm96_vm0, %v50_v2, 0  ;;  %v62_v11 = vld [vmem:[%s951_s2] sm:$0xff]  ;;  %614 = vmatprep.mubr.msk.bf16.mxu0 %vm96_vm0, %v649_v10  ;;  %v65_v16 = vld [vmem:[%s951_s2 + $0x18] sm:$0xff]  ;;  %v40_v18 = vld [vmem:[%s949_s0 + $0x30] sm:$0xff] }
   0x5   :  { %599 = vmatpush3.bf16.xpose.msra.mxu0 %v104_v7  ;;  %68 = vperm.xlu0 %647, %v62_v11   ;;  %v107_v13 = vsel %vm96_vm0, %v51_v6, 0  ;;  %v186_v17 = vld [vmem:[%s953_s4] sm:$0xff]  ;;  %v41_v19 = vld [vmem:[%s949_s0 + $0x38] sm:$0xff]  ;;  %v187_v20 = vld [vmem:[%s953_s4 + $0x8] sm:$0xff]  ;;  %v110_v21 = vsel %vm96_vm0, %v52_v14, 0 }
   0x6   :  { %635 = vmatprep.subr.msk.bf16.mxu0 %vm96_vm0, %v51_v6  ;;  %78 = vperm.xlu1 %648, %v64_v12   ;;  %v53_v22 = vpack.c.bf16 %v41_v19, %v40_v18  ;;  %v188_v23 = vld [vmem:[%s953_s4 + $0x10] sm:$0xff]  ;;  %v189_v24 = vld [vmem:[%s953_s4 + $0x18] sm:$0xff]  ;;  %v286_v25 = vld [vmem:[%s955_s6] sm:$0xff] }
   0x7   :  { %v42_v26 = vld [vmem:[%s949_s0 + $0x40] sm:$0xff]  ;;  %v43_v27 = vld [vmem:[%s949_s0 + $0x48] sm:$0xff]  ;;  %v288_v31 = vld [vmem:[%s955_s6 + $0x10] sm:$0xff] }
   0x8   :  { %v287_v28 = vld [vmem:[%s955_s6 + $0x8] sm:$0xff]  ;;  %v113_v29 = vsel %vm96_vm0, %v53_v22, 0  ;;  %v54_v30 = vpack.c.bf16 %v43_v27, %v42_v26  ;;  %v289_v32 = vld [vmem:[%s955_s6 + $0x18] sm:$0xff]  ;;  %v44_v33 = vld [vmem:[%s949_s0 + $0x50] sm:$0xff] }
   0x9   :  { %73 = vperm.xlu0 %647, %v63_v15   ;;  %v45_v34 = vld [vmem:[%s949_s0 + $0x58] sm:$0xff]  ;;  %v46_v37 = vld [vmem:[%s949_s0 + $0x60] sm:$0xff]  ;;  %v47_v38 = vld [vmem:[%s949_s0 + $0x68] sm:$0xff] }
   0xa   :  { %83 = vperm.xlu1 %648, %v65_v16   ;;  %v116_v35 = vsel %vm96_vm0, %v54_v30, 0  ;;  %v55_v36 = vpack.c.bf16 %v45_v34, %v44_v33  ;;  %v56_v40 = vpack.c.bf16 %v47_v38, %v46_v37  ;;  %v48_v41 = vld [vmem:[%s949_s0 + $0x70] sm:$0xff]  ;;  %v49_v42 = vld [vmem:[%s949_s0 + $0x78] sm:$0xff]  ;;  %v650_v46 = vld [vmem:[%s950_s1 + $0x8] sm:$0xff]  }
   0xb   :  { %v57_v44 = vpack.c.bf16 %v49_v42, %v48_v41  ;;  %v651_v47 = vld [vmem:[%s952_s3] sm:$0xff]   ;;  %v652_v2 = vld [vmem:[%s952_s3 + $0x8] sm:$0xff]  }
   0xc   :  { %v119_v39 = vsel %vm96_vm0, %v55_v36, 0  ;;  %v122_v43 = vsel %vm96_vm0, %v56_v40, 0  ;;  %622 = vmatprep.mubr.msk.bf16.mxu1 %vm220_vm1, %v651_v47  ;;  %v653_v3 = vld [vmem:[%s954_s5] sm:$0xff]  }
   0xd   :  { %601 = vmatpush3.bf16.xpose.msra.mxu0 %v107_v13  ;;  %192 = vperm.xlu0 %647, %v186_v17   ;;  %v125_v45 = vsel %vm96_vm0, %v57_v44, 0 }
   0xe   :  { %636 = vmatprep.subr.msk.bf16.mxu0 %vm96_vm0, %v52_v14  ;;  %197 = vperm.xlu1 %648, %v187_v20  }
  0x11   :  { %202 = vperm.xlu0 %647, %v188_v23  }
  0x12   :  { %207 = vperm.xlu1 %648, %v189_v24   ;;  %v379_v24 = vlaneseq }
  0x15   :  { %603 = vmatpush3.bf16.xpose.msra.mxu0 %v110_v21  ;;  %292 = vperm.xlu0 %647, %v286_v25   ;;  %v380_v25 = vand.u32 127, %v379_v24 }
  0x16   :  { %637 = vmatprep.subr.msk.bf16.mxu0 %vm96_vm0, %v53_v22  ;;  %297 = vperm.xlu1 %648, %v287_v28   ;;  %v654_v22 = vld [vmem:[%s954_s5 + $0x8] sm:$0xff]  }
  0x17   :  { %vm381_vm2 = vcmp.lt.s32.totalorder %v380_v25, 16 }
  0x19   :  { %302 = vperm.xlu0 %647, %v288_v31  }
  0x1a   :  { %307 = vperm.xlu1 %648, %v289_v32  }
  0x1d   :  { %605 = vmatpush3.bf16.xpose.msra.mxu0 %v113_v29 }
  0x1e   :  { %638 = vmatprep.subr.msk.bf16.mxu0 %vm96_vm0, %v54_v30 }
  0x25   :  { %607 = vmatpush3.bf16.xpose.msra.mxu0 %v116_v35 }
  0x26   :  { %639 = vmatprep.subr.msk.bf16.mxu0 %vm96_vm0, %v55_v36 }
  0x2d   :  { %609 = vmatpush3.bf16.xpose.msra.mxu0 %v119_v39 }
  0x2e   :  { %640 = vmatprep.subr.msk.bf16.mxu0 %vm96_vm0, %v56_v40 }
  0x35   :  { %611 = vmatpush3.bf16.xpose.msra.mxu0 %v122_v43 }
  0x36   :  { %641 = vmatprep.subr.msk.bf16.mxu0 %vm96_vm0, %v57_v44 }
  0x3d   :  { %613 = vmatpush3.bf16.xpose.msra.mxu0 %v125_v45 }
  0x44   :  { %615 = vmatmul.mubr.msk.bf16.vlgmr.msra.gmra.mrb[0].mxu0 %vm96_vm0, %v650_v46 }
  0x84   :  { %v69_v49 = vpop.permute.xlu0 %68 }
  0x85   :  { %v79_v48 = vpop.permute.xlu1 %78 }
  0x88   :  { %v74_v56 = vpop.permute.xlu0 %73 }
  0x89   :  { %v84_v53 = vpop.permute.xlu1 %83 }
  0x8c   :  { %v193_v4 = vpop.permute.xlu0 %192 }
  0x8d   :  { %v198_v5 = vpop.permute.xlu1 %197 }
  0x90   :  { %v203_v6 = vpop.permute.xlu0 %202 }
  0x91   :  { %v208_v10 = vpop.permute.xlu1 %207 }
  0x94   :  { %v293_v23 = vpop.permute.xlu0 %292 }
  0x95   :  { %v298_v30 = vpop.permute.xlu1 %297 }
  0x98   :  { %v303_v26 = vpop.permute.xlu0 %302 }
  0x99   :  { %v308_v39 = vpop.permute.xlu1 %307 }
 0x117   :  { %v616_v50 = vpop.f32.mrb[0].mxu0 }
 0x118   :  { %v170_v51 = vadd.f32 %v616_v50, %v79_v48  ;;  %v161_v52 = vpop.f32.mrb[1].mxu0 }
 0x119   :  { %v162_v54 = vadd.f32 %v161_v52, %v69_v49  ;;  %v617_v55 = vpop.f32.mrb[2].mxu0 }
 0x11a   :  { %v173_v57 = vadd.f32 %v617_v55, %v84_v53  ;;  %v164_v58 = vpop.f32.mrb[3].mxu0  ;;  %v178_v60 = vmax.f32 %v170_v51, 0.0 }
 0x11b   :  { %v165_v59 = vadd.f32 %v164_v58, %v74_v56  ;;  %v176_v62 = vmax.f32 %v162_v54, 0.0 }
 0x11c   :  { %v179_v61 = vmax.f32 %v173_v57, 0.0 }
 0x11d   :  { %v177_v63 = vmax.f32 %v165_v59, 0.0 }
 0x11e   :  { %v185_v0 = vpack.c.bf16 %v179_v61, %v178_v60 }
 0x11f   :  { %v184_v1 = vpack.c.bf16 %v177_v63, %v176_v62 }
 0x121   :  { %618 = vmatprep.subr.bf16.mxu1 %v184_v1 }
 0x122   :  { %619 = vmatpush3.bf16.msra.mxu1 %v184_v1 }
 0x123   :  { %620 = vmatprep.subr.bf16.mxu1 %v185_v0 }
 0x126   :  { %621 = vmatpush3.bf16.msra.mxu1 %v185_v0 }
 0x129   :  { %623 = vmatmul.mubr.msk.bf16.vlgmr.msra.gmra.mrb[0].mxu1 %vm220_vm1, %v652_v2 }
 0x12a   :  { %630 = vmatprep.mubr.msk.bf16.mxu1 %vm220_vm1, %v653_v3 }
 0x1fc   :  { %v624_v7 = vpop.f32.mrb[0].mxu1 }
 0x1fd   :  { %v270_v8 = vadd.f32 %v624_v7, %v203_v6  ;;  %v261_v9 = vpop.f32.mrb[1].mxu1 }
 0x1fe   :  { %v262_v11 = vadd.f32 %v261_v9, %v193_v4  ;;  %v625_v12 = vpop.f32.mrb[2].mxu1 }
 0x1ff   :  { %v273_v13 = vadd.f32 %v625_v12, %v208_v10  ;;  %v264_v14 = vpop.f32.mrb[3].mxu1  ;;  %v278_v16 = vmax.f32 %v270_v8, 0.0 }
 0x200   :  { %v265_v15 = vadd.f32 %v264_v14, %v198_v5  ;;  %v276_v18 = vmax.f32 %v262_v11, 0.0 }
 0x201   :  { %v279_v17 = vmax.f32 %v273_v13, 0.0 }
 0x202   :  { %v277_v19 = vmax.f32 %v265_v15, 0.0 }
 0x203   :  { %v285_v20 = vpack.c.bf16 %v279_v17, %v278_v16  ;;  %v437_v17 = vld [vmem:[%s956_s7 + $0x8] sm:$0xff] }
 0x204   :  { %v284_v21 = vpack.c.bf16 %v277_v19, %v276_v18 }
 0x206   :  { %626 = vmatprep.subr.bf16.mxu1 %v284_v21 }
 0x207   :  { %627 = vmatpush3.bf16.msra.mxu1 %v284_v21  ;;  %v438_v21 = vld [vmem:[%s956_s7 + $0x10] sm:$0xff] }
 0x208   :  { %628 = vmatprep.subr.bf16.mxu1 %v285_v20 }
 0x20b   :  { %629 = vmatpush3.bf16.msra.mxu1 %v285_v20 }
 0x20e   :  { %631 = vmatmul.mubr.msk.bf16.vlgmr.msra.gmra.mrb[4].mxu1 %vm220_vm1, %v654_v22  ;;  %v445_v22 = vld [vmem:[%s957_s8 + $0x8] sm:$0xff] }
 0x2e1   :  { %v632_v27 = vpop.f32.mrb[4].mxu1 }
 0x2e2   :  { %v865_v28 = vadd.f32 %v632_v27, %v303_v26  ;;  %v360_v29 = vpop.f32.mrb[5].mxu1 }
 0x2e3   :  { %v867_v31 = vadd.f32 %v360_v29, %v293_v23  ;;  %v633_v32 = vpop.f32.mrb[6].mxu1  ;;  %v436_v23 = vld [vmem:[%s956_s7] sm:$0xff] }
 0x2e4   :  { %v377_v33 = vmax.f32 %v865_v28, 0.0  ;;  %v363_v34 = vpop.f32.mrb[7].mxu1  ;;  %v880_v41 = vadd.f32 %v633_v32, %v308_v39 }
 0x2e5   :  { %v870_v35 = vadd.f32 %v363_v34, %v298_v30  ;;  %v375_v36 = vmax.f32 %v867_v31, 0.0  ;;  %v446_v30 = vld [vmem:[%s957_s8 + $0x10] sm:$0xff] }
 0x2e6   :  { %v386_v37 = vsel %vm381_vm2, %v377_v33, 0.0  ;;  %v378_v45 = vmax.f32 %v880_v41, 0.0 }
 0x2e7   :  { %v376_v38 = vmax.f32 %v870_v35, 0.0  ;;  %392 = vadd.xlane.f32.xlu0 %v386_v37  ;;  %v384_v42 = vsel %vm381_vm2, %v375_v36, 0.0  ;;  %v402_v46 = vmul.f32 %v386_v37, %v386_v37 }
 0x2e8   :  { %v400_v44 = vmul.f32 %v384_v42, %v384_v42  ;;  %v387_v47 = vsel %vm381_vm2, %v378_v45, 0.0 }
 0x2e9   :  { %v385_v40 = vsel %vm381_vm2, %v376_v38, 0.0  ;;  %v403_v48 = vmul.f32 %v387_v47, %v387_v47 }
 0x2ea   :  { %390 = vadd.xlane.f32.xlu1 %v385_v40  ;;  %v401_v43 = vmul.f32 %v385_v40, %v385_v40  ;;  %v444_v40 = vld [vmem:[%s957_s8] sm:$0xff] }
 0x2eb   :  { %388 = vadd.xlane.f32.xlu0 %v384_v42  ;;  %v439_v42 = vld [vmem:[%s956_s7 + $0x18] sm:$0xff] }
 0x2ee   :  { %406 = vadd.xlane.f32.xlu1 %v401_v43 }
 0x2ef   :  { %404 = vadd.xlane.f32.xlu0 %v400_v44 }
 0x2f2   :  { %408 = vadd.xlane.f32.xlu1 %v402_v46 }
 0x2f3   :  { %394 = vadd.xlane.f32.xlu0 %v387_v47  ;;  %v447_v47 = vld [vmem:[%s957_s8 + $0x18] sm:$0xff] }
 0x2f7   :  { %410 = vadd.xlane.f32.xlu0 %v403_v48 }
 0x374   :  { %v393_v49 = vpop.xlane.xlu0 %392 }
 0x375   :  { %v398_v55 = vmul.f32 0.0625, %v393_v49 }
 0x377   :  { %v391_v50 = vpop.xlane.xlu1 %390  ;;  %v418_v0 = vmul.f32 %v398_v55, %v398_v55 }
 0x378   :  { %v397_v51 = vmul.f32 0.0625, %v391_v50  ;;  %v389_v52 = vpop.xlane.xlu0 %388 }
 0x379   :  { %v396_v53 = vmul.f32 0.0625, %v389_v52 }
 0x37a   :  { %v417_v56 = vmul.f32 %v397_v51, %v397_v51 }
 0x37b   :  { %v407_v54 = vpop.xlane.xlu1 %406  ;;  %v416_v59 = vmul.f32 %v396_v53, %v396_v53 }
 0x37c   :  { %v413_v57 = vmul.f32 0.0625, %v407_v54  ;;  %v405_v58 = vpop.xlane.xlu0 %404 }
 0x37d   :  { %v412_v60 = vmul.f32 0.0625, %v405_v58 }
 0x37e   :  { %v421_v61 = vsub.f32 %v413_v57, %v417_v56 }
 0x37f   :  { %v420_v62 = vsub.f32 %v412_v60, %v416_v59  ;;  %v409_v63 = vpop.xlane.xlu1 %408 }
 0x380   :  { %v425_v1 = vmax.f32 %v421_v61, 0.0  ;;  %v414_v2 = vmul.f32 0.0625, %v409_v63  ;;  %v395_v3 = vpop.xlane.xlu0 %394 }
 0x381   :  { %v424_v4 = vmax.f32 %v420_v62, 0.0  ;;  %v399_v5 = vmul.f32 0.0625, %v395_v3 }
 0x382   :  { %v429_v6 = vadd.f32 1e-05, %v425_v1  ;;  %v422_v7 = vsub.f32 %v414_v2, %v418_v0 }
 0x383   :  { %v428_v8 = vadd.f32 1e-05, %v424_v4  ;;  %v419_v11 = vmul.f32 %v399_v5, %v399_v5 }
 0x384   :  { %655 = vrsqrt.f32 %v429_v6  ;;  %v426_v9 = vmax.f32 %v422_v7, 0.0  ;;  %v411_v10 = vpop.xlane.xlu0 %410 }
 0x385   :  { %v415_v12 = vmul.f32 0.0625, %v411_v10  ;;  %657 = vrsqrt.f32 %v428_v8 }
 0x386   :  { %v430_v13 = vadd.f32 1e-05, %v426_v9 }
 0x387   :  { %v423_v14 = vsub.f32 %v415_v12, %v419_v11 }
 0x388   :  { %659 = vrsqrt.f32 %v430_v13 }
 0x389   :  { %v427_v15 = vmax.f32 %v423_v14, 0.0 }
 0x38b   :  { %v431_v16 = vadd.f32 1e-05, %v427_v15 }
 0x38d   :  { %661 = vrsqrt.f32 %v431_v16 }
 0x38e   :  { %v656_v18 = vpop.eup %655 }
 0x38f   :  { %v441_v19 = vmul.f32 %v656_v18, %v437_v17  ;;  %v658_v20 = vpop.eup %657 }
 0x390   :  { %v440_v29 = vmul.f32 %v658_v20, %v436_v23 }
 0x391   :  { %463 = vperm.xlu0 %647, %v441_v19   ;;  %v449_v24 = vmul.f32 %v441_v19, %v397_v51 }
 0x392   :  { %v660_v25 = vpop.eup %659  ;;  %v448_v37 = vmul.f32 %v440_v29, %v396_v53 }
 0x393   :  { %v442_v26 = vmul.f32 %v660_v25, %v438_v21  ;;  %v453_v27 = vsub.f32 %v445_v22, %v449_v24 }
 0x394   :  { %v452_v43 = vsub.f32 %v444_v40, %v448_v37 }
 0x395   :  { %468 = vperm.xlu1 %648, %v442_v26   ;;  %487 = vperm.xlu0 %647, %v453_v27   ;;  %v450_v32 = vmul.f32 %v442_v26, %v398_v55 }
 0x397   :  { %v454_v34 = vsub.f32 %v446_v30, %v450_v32  ;;  %v662_v39 = vpop.eup %661 }
 0x398   :  { %v443_v44 = vmul.f32 %v662_v39, %v439_v42 }
 0x399   :  { %492 = vperm.xlu0 %647, %v454_v34   ;;  %458 = vperm.xlu1 %648, %v440_v29  }
 0x39a   :  { %v451_v46 = vmul.f32 %v443_v44, %v399_v5 }
 0x39c   :  { %v455_v48 = vsub.f32 %v447_v47, %v451_v46 }
 0x39d   :  { %482 = vperm.xlu1 %648, %v452_v43  }
 0x3a1   :  { %473 = vperm.xlu1 %648, %v443_v44  }
 0x3a5   :  { %497 = vperm.xlu1 %648, %v455_v48  }
 0x410   :  { %v464_v50 = vpop.permute.xlu0 %463 }
 0x411   :  { %v477_v56 = vmul.f32 %v464_v50, %v376_v38 }
 0x414   :  { %v469_v49 = vpop.permute.xlu1 %468  ;;  %v488_v53 = vpop.permute.xlu0 %487 }
 0x415   :  { %v501_v58 = vadd.f32 %v488_v53, %v477_v56  ;;  %v478_v60 = vmul.f32 %v469_v49, %v377_v33 }
 0x418   :  { %v459_v51 = vpop.permute.xlu1 %458  ;;  %v493_v59 = vpop.permute.xlu0 %492 }
 0x419   :  { %v476_v52 = vmul.f32 %v459_v51, %v375_v36  ;;  %v502_v61 = vadd.f32 %v493_v59, %v478_v60 }
 0x41c   :  { %v483_v54 = vpop.permute.xlu1 %482 }
 0x41d   :  { %v500_v55 = vadd.f32 %v483_v54, %v476_v52 }
 0x41f   :  { %504 = vxpose.xlu0.b32.start [1/4] (short) %v500_v55, 128 }
 0x420   :  { %v474_v57 = vpop.permute.xlu1 %473 }
 0x421   :  { %v479_v31 = vmul.f32 %v474_v57, %v378_v45 }
 0x423   :  { %505 = vxpose.xlu0.b32.cont [2/4] (short) %v501_v58, 128 }
 0x424   :  { %v498_v62 = vpop.permute.xlu1 %497 }
 0x425   :  { %v503_v36 = vadd.f32 %v498_v62, %v479_v31 }
 0x427   :  { %506 = vxpose.xlu0.b32.cont [3/4] (short) %v502_v61, 128 }
 0x42b   :  { %507 = vxpose.xlu0.b32.end [4/4] (short) %v503_v36, 128 }
 0x49f   :  { %v520_v63 = vpop.trf.xlu0 }
 0x4a0   :  { %536 = vst.msk [vmem:[#allocation2] sm:$0xff] %vm220_vm1, %v520_v63 }
 0x4a3   :  { %v521_v35 = vpop.trf.xlu0 }
 0x4a4   :  { %537 = vst.msk [vmem:[#allocation2 + $0x8] sm:$0xff] %vm220_vm1, %v521_v35 }
 0x4a7   :  { %v522_v38 = vpop.trf.xlu0 }
 0x4a8   :  { %538 = vst.msk [vmem:[#allocation2 + $0x10] sm:$0xff] %vm220_vm1, %v522_v38 }
 0x4ab   :  { %v523_v28 = vpop.trf.xlu0 }
 0x4ac   :  { %539 = vst.msk [vmem:[#allocation2 + $0x18] sm:$0xff] %vm220_vm1, %v523_v28 }
 0x4af   :  { %v524_v33 = vpop.trf.xlu0 }
 0x4b0   :  { %540 = vst.msk [vmem:[#allocation2 + $0x20] sm:$0xff] %vm220_vm1, %v524_v33 }
 0x4b3   :  { %v525_v41 = vpop.trf.xlu0 }
 0x4b4   :  { %541 = vst.msk [vmem:[#allocation2 + $0x28] sm:$0xff] %vm220_vm1, %v525_v41 }
 0x4b7   :  { %v526_v45 = vpop.trf.xlu0 }
 0x4b8   :  { %542 = vst.msk [vmem:[#allocation2 + $0x30] sm:$0xff] %vm220_vm1, %v526_v45 }
 0x4bb   :  { %v527_v0 = vpop.trf.xlu0 }
 0x4bc   :  { %543 = vst.msk [vmem:[#allocation2 + $0x38] sm:$0xff] %vm220_vm1, %v527_v0 }
 0x4bf   :  { %v528_v1 = vpop.trf.xlu0 }
 0x4c0   :  { %544 = vst.msk [vmem:[#allocation2 + $0x40] sm:$0xff] %vm220_vm1, %v528_v1 }
 0x4c3   :  { %v529_v2 = vpop.trf.xlu0 }
 0x4c4   :  { %545 = vst.msk [vmem:[#allocation2 + $0x48] sm:$0xff] %vm220_vm1, %v529_v2 }
 0x4c7   :  { %v530_v3 = vpop.trf.xlu0 }
 0x4c8   :  { %546 = vst.msk [vmem:[#allocation2 + $0x50] sm:$0xff] %vm220_vm1, %v530_v3 }
 0x4cb   :  { %v531_v4 = vpop.trf.xlu0 }
 0x4cc   :  { %547 = vst.msk [vmem:[#allocation2 + $0x58] sm:$0xff] %vm220_vm1, %v531_v4 }
 0x4cf   :  { %v532_v5 = vpop.trf.xlu0 }
 0x4d0   :  { %548 = vst.msk [vmem:[#allocation2 + $0x60] sm:$0xff] %vm220_vm1, %v532_v5 }
 0x4d3   :  { %v533_v6 = vpop.trf.xlu0 }
 0x4d4   :  { %549 = vst.msk [vmem:[#allocation2 + $0x68] sm:$0xff] %vm220_vm1, %v533_v6 }
 0x4d7   :  { %v534_v7 = vpop.trf.xlu0 }
 0x4d8   :  { %550 = vst.msk [vmem:[#allocation2 + $0x70] sm:$0xff] %vm220_vm1, %v534_v7 }
 0x4db   :  { %v535_v8 = vpop.trf.xlu0 }
 0x4dc   :  { %551 = vst.msk [vmem:[#allocation2 + $0x78] sm:$0xff] %vm220_vm1, %v535_v8 }
 0x4dd   :  { %556 = vsyncadd [#allocation3], 1792  ;;  %s688_s7 = smov [#allocation2]  }
 0x4de   :  { %s557_s8 = sshll.u32 %s688_s7, 4  ;;  %s558_s8 = int_to_ptr.vmem [resolvable:$true] %s557_s8 }
 0x4df   :  { %s663_s19 = scalar_lea.vmem %s558_s8, 256  ;;  %s667_s20 = scalar_lea.vmem %s558_s8, 2048 }
 0x4e0   :  { %p664_p0 = scmp.ne.s32.totalorder %s558_s8, %s663_s19  ;;  %p668_p1 = scmp.lt.s32.totalorder %s558_s8, %s558_s8 }
 0x4e1   :  { %p669_p2 = scmp.lt.s32.totalorder %s667_s20, %s663_s19 }
 0x4e3   :  { %p670_p3 = por %p669_p2, %p668_p1 }
 0x4e5   :  { %p671_p4 = pnand %p670_p3, %p664_p0 }
 0x4e7   :  { %674 = shalt.err (!%p671_p4)
}
 0x4e8   :  { %s675_s23 = scalar_lea.hbm %s958_s9, 256 }
 0x4e9   :  { %p676_p5 = scmp.ne.s32.totalorder %s958_s9, %s675_s23  ;;  %p679_p6 = scmp.lt.u32.totalorder %s675_s23, %s958_s9 }
 0x4eb   :  { %p681_p7 = pnand %p679_p6, %p676_p5 }
 0x4ed   :  { %684 = shalt.err (!%p681_p7)
}
 0x4ee   :  { %s689_s26 = smov 128   ;;  %s690_s3 = smov 8  }
 0x4ef   :  { %563 = dma.vmem_to_hbm [thread:$0]  %s558_s8, 256, %s958_s9, [#allocation3], %s689_s26, %s689_s26, %s690_s3  }
 0x4f0   :  { %685 = dma.done.wait [#allocation3], 2048  }
 0x4f1   :  { %686 = vsyncadd [#allocation3], 4294965248 }
 0x4f2   :  { %567 = vsyncpa [#allocation3], 1 }

</bundles_post_ra>
